<compile_context>
chip_gen: v5e
topology: v5e:2x2
jax: 0.10.0
libtpu: 0.0.40
codegen_flags: <defaults>
</compile_context>

<pallas_src>
import jax
import jax.numpy as jnp
from jax.experimental import pallas as pl
from jax.experimental.pallas import tpu as pltpu


def _ds_fc_kernel(x_ref, w1_ref, b1_ref, w2_ref, b2_ref, w3_ref, b3_ref,
                  out_ref):
    x = x_ref[...]

    # linear1 + ReLU (accumulate in f32 on the MXU)
    h1 = jnp.dot(x, w1_ref[...], preferred_element_type=jnp.float32)
    h1 = jnp.maximum(h1 + b1_ref[...], 0.0)

    # linear2 + ReLU
    h2 = jnp.dot(h1.astype(w2_ref.dtype), w2_ref[...],
                 preferred_element_type=jnp.float32)
    h2 = jnp.maximum(h2 + b2_ref[...], 0.0)

    # fused heads: [linear31 | linear32] in a single (D2, 2*D3) matmul
    z = jnp.dot(h2.astype(w3_ref.dtype), w3_ref[...],
                preferred_element_type=jnp.float32) + b3_ref[...]

    # sigmoid via EUP exp + EUP approximate reciprocal (frees VALU slots).
    sig = pl.reciprocal(1.0 + jnp.exp(-z), approx=True)

    # single lane-dense (TB, 2*D3) store
    out_ref[...] = sig.astype(out_ref.dtype)


def downstream_fc_forward(x, params, *, block_batch=512, compute_dtype=None):
    """x: (B, D0). params: weights stored as (in, out), biases as (1, out).

    Returns (B, 2, D3) matching torch.transpose(torch.stack((x1, x2)), 0, 1).
    """
    B, D0 = x.shape
    D1 = params["w1"].shape[1]
    D2 = params["w2"].shape[1]
    D3 = params["w31"].shape[1]

    # Fuse the two heads along the output (lane) axis.
    w3 = jnp.concatenate([params["w31"], params["w32"]], axis=1)   # (D2, 2*D3)
    b3 = jnp.concatenate([params["b31"], params["b32"]], axis=1)   # (1, 2*D3)

    cd = compute_dtype if compute_dtype is not None else x.dtype
    xin = x.astype(cd)
    w1 = params["w1"].astype(cd)
    w2 = params["w2"].astype(cd)
    w3 = w3.astype(cd)
    b1 = params["b1"].astype(jnp.float32)
    b2 = params["b2"].astype(jnp.float32)
    b3 = b3.astype(jnp.float32)

    # Batch tile: multiple of 8, or the full (possibly tiny) batch.
    TB = B if B <= block_batch else block_batch
    grid = (pl.cdiv(B, TB),)

    itemsize = jnp.dtype(cd).itemsize
    cost = pl.CostEstimate(
        flops=2 * B * (D0 * D1 + D1 * D2 + D2 * 2 * D3),
        transcendentals=B * 2 * D3,
        bytes_accessed=(B * D0 * itemsize
                        + (D0 * D1 + D1 * D2 + D2 * 2 * D3) * itemsize
                        + (D1 + D2 + 2 * D3) * 4
                        + B * 2 * D3 * 4),
    )

    resident = lambda shape: pl.BlockSpec(shape, lambda i: (0, 0))

    flat = pl.pallas_call(
        _ds_fc_kernel,
        out_shape=jax.ShapeDtypeStruct((B, 2 * D3), jnp.float32),
        grid_spec=pltpu.PrefetchScalarGridSpec(
            num_scalar_prefetch=0,
            grid=grid,
            in_specs=[
                pl.BlockSpec((TB, D0), lambda i: (i, 0)),   # x: pipelined
                resident((D0, D1)), resident((1, D1)),      # W1, b1: resident
                resident((D1, D2)), resident((1, D2)),      # W2, b2
                resident((D2, 2 * D3)), resident((1, 2 * D3)),  # fused W3, b3
            ],
            out_specs=pl.BlockSpec((TB, 2 * D3), lambda i: (i, 0)),
        ),
        compiler_params=pltpu.CompilerParams(
            dimension_semantics=("parallel",)),
        cost_estimate=cost,
    )(xin, w1, b1, w2, b2, w3, b3)

    # (B, 2*D3) -> (B, 2, D3): free row-major reshape.
    # row b = [sigmoid(.@W31), sigmoid(.@W32)]  ==  stack+transpose semantics.
    return flat.reshape(B, 2, D3)


def init_params(key, layers):
    """Deterministic synthetic init matching nn.Linear shapes.
    torch Linear weight is (out, in); we store its transpose (in, out)."""
    d0, d1, d2, d3 = layers
    ks = jax.random.split(key, 8)

    def lin(kw, kb, fan_in, fan_out):
        bound = 1.0 / jnp.sqrt(fan_in)
        w = jax.random.uniform(kw, (fan_in, fan_out), jnp.float32, -bound, bound)
        b = jax.random.uniform(kb, (1, fan_out), jnp.float32, -bound, bound)
        return w, b

    w1, b1 = lin(ks[0], ks[1], d0, d1)
    w2, b2 = lin(ks[2], ks[3], d1, d2)
    w31, b31 = lin(ks[4], ks[5], d2, d3)
    w32, b32 = lin(ks[6], ks[7], d2, d3)
    return dict(w1=w1, b1=b1, w2=w2, b2=b2,
                w31=w31, b31=b31, w32=w32, b32=b32)


def reference_forward(x, p):
    h1 = jnp.maximum(x @ p["w1"] + p["b1"], 0.0)
    h2 = jnp.maximum(h1 @ p["w2"] + p["b2"], 0.0)
    x1 = jax.nn.sigmoid(h2 @ p["w31"] + p["b31"])
    x2 = jax.nn.sigmoid(h2 @ p["w32"] + p["b32"])
    return jnp.transpose(jnp.stack((x1, x2)), (1, 0, 2))


if __name__ == "__main__":
    layers = [32, 64, 64, 16]   # layers[0..3] of DownstreamFC

    key = jax.random.PRNGKey(0)
    kx, kp, kx2 = jax.random.split(key, 3)
    params = init_params(kp, layers)

    # Small shape check (single grid step, whole batch in one tile).
    batch = 8
    x = jax.random.normal(kx, (batch, layers[0]), jnp.float32)
    out = jax.block_until_ready(downstream_fc_forward(x, params))
    assert out.shape == (batch, 2, layers[3]), out.shape
    ref = reference_forward(x, params)
    # approx reciprocal in the sigmoid -> slightly looser tolerance.
    assert jnp.allclose(out, ref, atol=2e-3, rtol=2e-3), \
        float(jnp.max(jnp.abs(out - ref)))

    # Larger batch exercising the pipelined batch grid (4 parallel tiles).
    batch2 = 1024
    x2 = jax.random.normal(kx2, (batch2, layers[0]), jnp.float32)
    out2 = jax.block_until_ready(
        downstream_fc_forward(x2, params, block_batch=256))
    assert out2.shape == (batch2, 2, layers[3]), out2.shape
    ref2 = reference_forward(x2, params)
    assert jnp.allclose(out2, ref2, atol=2e-3, rtol=2e-3), \
        float(jnp.max(jnp.abs(out2 - ref2)))

    print("KERNEL_OK")
</pallas_src>

<mosaic_0001>
module attributes {stable_mosaic.version = 11 : i64} {
  func.func @_ds_fc_kernel(%arg0: i32, %arg1: memref<8x32xf32, #tpu.memory_space<vmem>>, %arg2: memref<32x64xf32, #tpu.memory_space<vmem>>, %arg3: memref<1x64xf32, #tpu.memory_space<vmem>>, %arg4: memref<64x64xf32, #tpu.memory_space<vmem>>, %arg5: memref<1x64xf32, #tpu.memory_space<vmem>>, %arg6: memref<64x32xf32, #tpu.memory_space<vmem>>, %arg7: memref<1x32xf32, #tpu.memory_space<vmem>>, %arg8: memref<8x32xf32, #tpu.memory_space<vmem>>) attributes {dimension_semantics = [#tpu.dimension_semantics<parallel>], iteration_bounds = array<i64: 1>, scalar_prefetch = 0 : i64, scratch_operands = 0 : i64, tpu.core_type = #tpu.core_type<tc>, window_params = [{transform_indices = @transform_0, window_bounds = array<i64: 8, 32>}, {pipeline_mode = #tpu.pipeline_mode<synchronous>, transform_indices = @transform_1, window_bounds = array<i64: 32, 64>}, {pipeline_mode = #tpu.pipeline_mode<synchronous>, transform_indices = @transform_2, window_bounds = array<i64: 1, 64>}, {pipeline_mode = #tpu.pipeline_mode<synchronous>, transform_indices = @transform_3, window_bounds = array<i64: 64, 64>}, {pipeline_mode = #tpu.pipeline_mode<synchronous>, transform_indices = @transform_4, window_bounds = array<i64: 1, 64>}, {pipeline_mode = #tpu.pipeline_mode<synchronous>, transform_indices = @transform_5, window_bounds = array<i64: 64, 32>}, {pipeline_mode = #tpu.pipeline_mode<synchronous>, transform_indices = @transform_6, window_bounds = array<i64: 1, 32>}, {transform_indices = @transform_7, window_bounds = array<i64: 8, 32>}]} {
    %c0 = arith.constant 0 : index
    %c0_0 = arith.constant 0 : index
    %0 = vector.load %arg1[%c0, %c0_0] : memref<8x32xf32, #tpu.memory_space<vmem>>, vector<8x32xf32>
    %c0_1 = arith.constant 0 : index
    %c0_2 = arith.constant 0 : index
    %1 = vector.load %arg2[%c0_1, %c0_2] : memref<32x64xf32, #tpu.memory_space<vmem>>, vector<32x64xf32>
    %cst = arith.constant dense<0.000000e+00> : vector<8x64xf32>
    %2 = tpu.matmul %0, %1, %cst {dimension_numbers = #tpu.dot_dimension_numbers<[1], [0], [0], [1], [0, 0, 1, 1], [], []>} : vector<8x32xf32>, vector<32x64xf32>, vector<8x64xf32> -> vector<8x64xf32>
    %c0_3 = arith.constant 0 : index
    %c0_4 = arith.constant 0 : index
    %3 = vector.load %arg3[%c0_3, %c0_4] : memref<1x64xf32, #tpu.memory_space<vmem>>, vector<1x64xf32>
    %4 = vector.broadcast %3 : vector<1x64xf32> to vector<8x64xf32>
    %5 = arith.addf %2, %4 : vector<8x64xf32>
    %cst_5 = arith.constant 0.000000e+00 : f32
    %6 = vector.broadcast %cst_5 : f32 to vector<8x64xf32>
    %7 = arith.maximumf %5, %6 : vector<8x64xf32>
    %c0_6 = arith.constant 0 : index
    %c0_7 = arith.constant 0 : index
    %8 = vector.load %arg4[%c0_6, %c0_7] : memref<64x64xf32, #tpu.memory_space<vmem>>, vector<64x64xf32>
    %cst_8 = arith.constant dense<0.000000e+00> : vector<8x64xf32>
    %9 = tpu.matmul %7, %8, %cst_8 {dimension_numbers = #tpu.dot_dimension_numbers<[1], [0], [0], [1], [0, 0, 1, 1], [], []>} : vector<8x64xf32>, vector<64x64xf32>, vector<8x64xf32> -> vector<8x64xf32>
    %c0_9 = arith.constant 0 : index
    %c0_10 = arith.constant 0 : index
    %10 = vector.load %arg5[%c0_9, %c0_10] : memref<1x64xf32, #tpu.memory_space<vmem>>, vector<1x64xf32>
    %11 = vector.broadcast %10 : vector<1x64xf32> to vector<8x64xf32>
    %12 = arith.addf %9, %11 : vector<8x64xf32>
    %cst_11 = arith.constant 0.000000e+00 : f32
    %13 = vector.broadcast %cst_11 : f32 to vector<8x64xf32>
    %14 = arith.maximumf %12, %13 : vector<8x64xf32>
    %c0_12 = arith.constant 0 : index
    %c0_13 = arith.constant 0 : index
    %15 = vector.load %arg6[%c0_12, %c0_13] : memref<64x32xf32, #tpu.memory_space<vmem>>, vector<64x32xf32>
    %cst_14 = arith.constant dense<0.000000e+00> : vector<8x32xf32>
    %16 = tpu.matmul %14, %15, %cst_14 {dimension_numbers = #tpu.dot_dimension_numbers<[1], [0], [0], [1], [0, 0, 1, 1], [], []>} : vector<8x64xf32>, vector<64x32xf32>, vector<8x32xf32> -> vector<8x32xf32>
    %c0_15 = arith.constant 0 : index
    %c0_16 = arith.constant 0 : index
    %17 = vector.load %arg7[%c0_15, %c0_16] : memref<1x32xf32, #tpu.memory_space<vmem>>, vector<1x32xf32>
    %18 = vector.broadcast %17 : vector<1x32xf32> to vector<8x32xf32>
    %19 = arith.addf %16, %18 : vector<8x32xf32>
    %cst_17 = arith.constant 0.000000e+00 : f32
    %20 = vector.broadcast %cst_17 : f32 to vector<8x32xf32>
    %21 = arith.subf %20, %19 : vector<8x32xf32>
    %22 = math.exp %21 : vector<8x32xf32>
    %cst_18 = arith.constant 1.000000e+00 : f32
    %23 = vector.broadcast %cst_18 : f32 to vector<8x32xf32>
    %24 = arith.addf %23, %22 : vector<8x32xf32>
    %25 = tpu.reciprocal %24 {approx = true} : vector<8x32xf32> -> vector<8x32xf32>
    %c0_19 = arith.constant 0 : index
    %c0_20 = arith.constant 0 : index
    %26 = vector.load %arg8[%c0_19, %c0_20] : memref<8x32xf32, #tpu.memory_space<vmem>>, vector<8x32xf32>
    tpu.vector_store %arg8[%c0_19, %c0_20], %25 {strides = array<i32>} : memref<8x32xf32, #tpu.memory_space<vmem>>, vector<8x32xf32>,
    return
  }
  func.func @transform_0(%arg0: i32) -> (i32, i32) {
    %c0_i32 = arith.constant 0 : i32
    %c0_i32_0 = arith.constant 0 : i32
    return %arg0, %c0_i32 : i32, i32
  }
  func.func @transform_1(%arg0: i32) -> (i32, i32) {
    %c0_i32 = arith.constant 0 : i32
    %c0_i32_0 = arith.constant 0 : i32
    %c0_i32_1 = arith.constant 0 : i32
    return %c0_i32, %c0_i32_0 : i32, i32
  }
  func.func @transform_2(%arg0: i32) -> (i32, i32) {
    %c0_i32 = arith.constant 0 : i32
    %c0_i32_0 = arith.constant 0 : i32
    %c0_i32_1 = arith.constant 0 : i32
    return %c0_i32, %c0_i32_0 : i32, i32
  }
  func.func @transform_3(%arg0: i32) -> (i32, i32) {
    %c0_i32 = arith.constant 0 : i32
    %c0_i32_0 = arith.constant 0 : i32
    %c0_i32_1 = arith.constant 0 : i32
    return %c0_i32, %c0_i32_0 : i32, i32
  }
  func.func @transform_4(%arg0: i32) -> (i32, i32) {
    %c0_i32 = arith.constant 0 : i32
    %c0_i32_0 = arith.constant 0 : i32
    %c0_i32_1 = arith.constant 0 : i32
    return %c0_i32, %c0_i32_0 : i32, i32
  }
  func.func @transform_5(%arg0: i32) -> (i32, i32) {
    %c0_i32 = arith.constant 0 : i32
    %c0_i32_0 = arith.constant 0 : i32
    %c0_i32_1 = arith.constant 0 : i32
    return %c0_i32, %c0_i32_0 : i32, i32
  }
  func.func @transform_6(%arg0: i32) -> (i32, i32) {
    %c0_i32 = arith.constant 0 : i32
    %c0_i32_0 = arith.constant 0 : i32
    %c0_i32_1 = arith.constant 0 : i32
    return %c0_i32, %c0_i32_0 : i32, i32
  }
  func.func @transform_7(%arg0: i32) -> (i32, i32) {
    %c0_i32 = arith.constant 0 : i32
    %c0_i32_0 = arith.constant 0 : i32
    return %arg0, %c0_i32 : i32, i32
  }
}

</mosaic_0001>

<bundles_post_ra>
// kernel: tpu_custom_call.1
= control target key start
LH: loop header
LB: loop body
LE: loop exit
PB: predicated region body
PF: predicated region fallthrough
CT: control target
= control target key end

     0   :  { %12 = vsyncpa [#allocation3], 0  ;;  %s353_s0 = inlined_call_operand.hbm [shape: f32[8,32], index: 0, kind: input, shape index: {}]   ;;  %s354_s1 = inlined_call_operand.vmem [shape: f32[32,64], index: 1, kind: input, shape index: {}]   ;;  %s355_s2 = inlined_call_operand.vmem [shape: f32[1,64], index: 2, kind: input, shape index: {}]   ;;  %s356_s3 = inlined_call_operand.vmem [shape: f32[64,64], index: 3, kind: input, shape index: {}]   ;;  %s357_s4 = inlined_call_operand.vmem [shape: f32[1,64], index: 4, kind: input, shape index: {}]   ;;  %s358_s5 = inlined_call_operand.vmem [shape: f32[64,32], index: 5, kind: input, shape index: {}]   ;;  %s359_s6 = inlined_call_operand.vmem [shape: f32[1,32], index: 6, kind: input, shape index: {}]   ;;  %s360_s7 = inlined_call_operand.hbm [shape: f32[8,32], index: 7, kind: output, shape index: {}]  }
   0x1   :  { %13 = vsyncpa [#allocation4], 0  ;;  %s19_s26 = sshll.u32 %s353_s0, 4  ;;  %s234_s27 = smov [#allocation2]   ;;  %s20_s26 = int_to_ptr.hbm [resolvable:$true] %s19_s26 }
   0x2   :  { %s21_s28 = sshll.u32 %s234_s27, 4  ;;  %s22_s28 = int_to_ptr.vmem [resolvable:$true] %s21_s28 }
   0x3   :  { %24 = dma.hbm_to_vmem [thread:$0]  %s20_s26, 128, %s22_s28, [#allocation3]  }
   0x4   :  { %230 = dma.done.wait [#allocation3], 128  }
   0x5   :  { %231 = vsyncadd [#allocation3], 4294967168  ;;  %v45_v0 = vld [vmem:[%s354_s1 + $0x18] sm:$0xff]  ;;  %v44_v1 = vld [vmem:[%s354_s1 + $0x10] sm:$0xff]  ;;  %vm50_vm0 = vcmask 261120   ;;  %vm87_vm1 = vcmask 523264  }
   0x6   :  { %66 = vmatpush.msra.mxu0 %v45_v0  ;;  %v82_v2 = vld [vmem:[%s356_s3 + $0x38] sm:$0xff]  ;;  %v43_v3 = vld [vmem:[%s354_s1 + $0x8] sm:$0xff]  ;;  %v81_v4 = vld [vmem:[%s356_s3 + $0x30] sm:$0xff]  ;;  %s160_s25 = sshll.u32 %s360_s7, 4  ;;  %s161_s25 = int_to_ptr.hbm [resolvable:$true] %s160_s25 }
   0x7   :  { %99 = vmatpush.msra.mxu1 %v82_v2  ;;  %v80_v5 = vld [vmem:[%s356_s3 + $0x28] sm:$0xff]  ;;  %v42_v6 = vld [vmem:[%s354_s1] sm:$0xff]  ;;  %v78_v9 = vld [vmem:[%s356_s3 + $0x18] sm:$0xff] }
   0x8   :  { %67 = vmatpush.msra.mxu0 %v44_v1  ;;  %v41_v7 = vld [vmem:[#allocation2] sm:$0xff]  ;;  %v77_v10 = vld [vmem:[%s356_s3 + $0x10] sm:$0xff]  ;;  %v76_v11 = vld [vmem:[%s356_s3 + $0x8] sm:$0xff] }
   0x9   :  { %100 = vmatpush.msra.mxu1 %v81_v4  ;;  %v79_v8 = vld [vmem:[%s356_s3 + $0x20] sm:$0xff]  ;;  %v119_v13 = vld [vmem:[%s358_s5 + $0x38] sm:$0xff]  ;;  %v118_v14 = vld [vmem:[%s358_s5 + $0x30] sm:$0xff] }
   0xa   :  { %68 = vmatpush.msra.mxu0 %v43_v3  ;;  %v75_v12 = vld [vmem:[%s356_s3] sm:$0xff]  ;;  %135 = vmatpush.msra.mxu2 %v119_v13  ;;  %v117_v15 = vld [vmem:[%s358_s5 + $0x28] sm:$0xff]  ;;  %v115_v17 = vld [vmem:[%s358_s5 + $0x18] sm:$0xff] }
   0xb   :  { %101 = vmatpush.msra.mxu1 %v80_v5  ;;  %v116_v16 = vld [vmem:[%s358_s5 + $0x20] sm:$0xff]  ;;  %v114_v22 = vld [vmem:[%s358_s5 + $0x10] sm:$0xff]  ;;  %v113_v23 = vld [vmem:[%s358_s5 + $0x8] sm:$0xff] }
   0xc   :  { %69 = vmatpush.msra.mxu0 %v42_v6  ;;  %136 = vmatpush.msra.mxu2 %v118_v14  ;;  %v175_v18 = vld [vmem:[%s355_s2] ss:$0 sm:$0xff] }
   0xd   :  { %170 = vmatmul.msk.f32.vlgmr.msra.gmra.mxu0 %vm50_vm0, %v41_v7  ;;  %102 = vmatpush.msra.mxu1 %v79_v8  ;;  %v112_v24 = vld [vmem:[%s358_s5] sm:$0xff]  ;;  %s235_s5 = smov [#allocation5]  }
   0xe   :  { %137 = vmatpush.msra.mxu2 %v117_v15  ;;  %v176_v25 = vld [vmem:[%s357_s4] ss:$0 sm:$0xff]  ;;  %s158_s1 = sshll.u32 %s235_s5, 4  ;;  %s159_s1 = int_to_ptr.vmem [resolvable:$true] %s158_s1 }
   0xf   :  { %103 = vmatpush.msra.mxu1 %v78_v9  ;;  %v177_v29 = vld [vmem:[%s359_s6] ss:$0 sm:$0xff] }
  0x10   :  { %138 = vmatpush.msra.mxu2 %v116_v16 }
  0x11   :  { %104 = vmatpush.msra.mxu1 %v77_v10 }
  0x12   :  { %139 = vmatpush.msra.mxu2 %v115_v17 }
  0x13   :  { %105 = vmatpush.msra.mxu1 %v76_v11 }
  0x14   :  { %140 = vmatpush.msra.mxu2 %v114_v22 }
  0x15   :  { %106 = vmatpush.msra.mxu1 %v75_v12 }
  0x16   :  { %141 = vmatpush.msra.mxu2 %v113_v23 }
  0x18   :  { %142 = vmatpush.msra.mxu2 %v112_v24 }
  0x8a   :  { %v71_v19 = vpop.f32.mrf.mxu0 }
  0x8b   :  { %v72_v20 = vadd.f32 %v175_v18, %v71_v19 }
  0x8d   :  { %v74_v21 = vmax.f32 %v72_v20, 0.0 }
  0x8f   :  { %171 = vmatmul.msk.f32.vlgmr.msra.gmra.mxu1 %vm87_vm1, %v74_v21 }
 0x10c   :  { %v108_v26 = vpop.f32.mrf.mxu1 }
 0x10d   :  { %v109_v27 = vadd.f32 %v176_v25, %v108_v26 }
 0x10f   :  { %v111_v28 = vmax.f32 %v109_v27, 0.0 }
 0x111   :  { %172 = vmatmul.msk.f32.vlgmr.msra.gmra.mxu2 %vm87_vm1, %v111_v28 }
 0x194   :  { %v144_v30 = vpop.f32.mrf.mxu2 }
 0x195   :  { %v145_v31 = vadd.f32 %v177_v29, %v144_v30 }
 0x197   :  { %v147_v32 = vsub.f32 0.0, %v145_v31 }
 0x199   :  { %v148_v33 = vmul.f32 1.442695, %v147_v32 }
 0x19b   :  { %178 = vpow2.f32 %v148_v33 }
 0x1a1   :  { %v179_v34 = vpop.eup %178 }
 0x1a2   :  { %v150_v35 = vadd.f32 1.0, %v179_v34 }
 0x1a4   :  { %180 = vrcp.f32 %v150_v35 }
 0x1aa   :  { %v181_v36 = vpop.eup %180 }
 0x1ab   :  { %152 = vst.msk [vmem:[#allocation5] sm:$0xff] %vm50_vm0, %v181_v36 }
 0x1ac   :  { %163 = dma.vmem_to_hbm [thread:$0]  %s159_s1, 128, %s161_s25, [#allocation4]  }
 0x1ad   :  { %232 = dma.done.wait [#allocation4], 128  }
 0x1ae   :  { %233 = vsyncadd [#allocation4], 4294967168 }
 0x1af   :  { %168 = vsyncpa [#allocation3], 1 }
 0x1b0   :  { %169 = vsyncpa [#allocation4], 1 }

</bundles_post_ra>
